<compile_context>
chip_gen: v5e
topology: v5e:2x2
jax: 0.10.0
libtpu: 0.0.40
codegen_flags: <defaults>
</compile_context>

<pallas_src>
import jax
import jax.numpy as jnp
import numpy as np
from jax import lax
from jax.experimental import pallas as pl
from jax.experimental.pallas import tpu as pltpu

EPS = 1e-5
_PAD = 8  # aligned (multiple-of-8 sublane) zero-pad region above/below the slab rows


def _default_vmem_limit():
    # v7x: 64 MiB physical -> ~48 MiB scoped; v5e/v6e: 128 MiB -> ~96 MiB scoped.
    try:
        cap = int(pltpu.get_tpu_info().vmem_capacity_bytes)
    except Exception:  # older jax / query unavailable -> conservative default
        cap = 0
    if cap < 32 * 1024 * 1024:
        return 32 * 1024 * 1024
    return int(min(cap * 3 // 4, 100 * 1024 * 1024))


_VMEM_LIMIT = _default_vmem_limit()


# ----------------------------------------------------------------------------- kernels
def _make_conv_stats_kernel(fuse_bn_relu):
    """3x3 conv (3 row-shifted lane-dense MXU matmuls) + per-image BN partial stats.

    refs (fused):     x, w_toe, scale, shift | y, stats | slab
    refs (non-fused): x, w_toe               | y, stats | slab

      x         : (1, H, W*Cin)      bf16  one image, lane-dense
      w_toe     : (3, W*Cin, W*Cout) bf16  block-Toeplitz weights (dx taps + width edges folded in)
      scale/shift: (1, W*Cin)        f32   previous stage's BN affine (fused BN+ReLU pre-transform)
      y         : (1, H, W*Cout)     bf16  conv output (pre-BN)
      stats     : (1, 2, W*Cout)     f32   per-image [sum; sumsq] over rows
      slab      : (H + 2*_PAD, W*Cin) f32  VMEM halo slab; rows _PAD.._PAD+H hold the
                  (transformed) activation, rows _PAD-1 and _PAD+H stay zero (row padding).
    """

    def kernel(*refs):
        if fuse_bn_relu:
            x_ref, w_ref, sc_ref, sh_ref, y_ref, st_ref, slab = refs
        else:
            x_ref, w_ref, y_ref, st_ref, slab = refs

        H = x_ref.shape[1]
        Lin = x_ref.shape[2]

        x = x_ref[0].astype(jnp.float32)                           # (H, Lin)
        if fuse_bn_relu:
            # Previous stage's BatchNorm + ReLU, applied in VMEM (no HBM round trip).
            x = jnp.maximum(x * sc_ref[...] + sh_ref[...], 0.0)

        zeros = jnp.zeros((_PAD, Lin), jnp.float32)
        slab[pl.ds(0, _PAD), :] = zeros                            # top halo (row _PAD-1 is read)
        slab[pl.ds(_PAD + H, _PAD), :] = zeros                     # bottom halo (row _PAD+H is read)
        slab[pl.ds(_PAD, H), :] = x                                # aligned data store

        # dy taps: output row r consumes slab rows r+_PAD-1 / r+_PAD / r+_PAD+1.
        acc = jnp.dot(slab[pl.ds(_PAD - 1, H), :].astype(jnp.bfloat16), w_ref[0],
                      preferred_element_type=jnp.float32)
        acc = acc + jnp.dot(slab[pl.ds(_PAD, H), :].astype(jnp.bfloat16), w_ref[1],
                            preferred_element_type=jnp.float32)
        acc = acc + jnp.dot(slab[pl.ds(_PAD + 1, H), :].astype(jnp.bfloat16), w_ref[2],
                            preferred_element_type=jnp.float32)
        # Conv bias intentionally omitted: it cancels exactly under train-mode BatchNorm.

        y_ref[0] = acc.astype(y_ref.dtype)
        st_ref[0] = jnp.concatenate(
            [jnp.sum(acc, axis=0, keepdims=True),
             jnp.sum(acc * acc, axis=0, keepdims=True)], axis=0)

    return kernel


def _bn_relu_kernel(y_ref, sc_ref, sh_ref, o_ref):
    """Final BatchNorm (pre-folded scale/shift) + ReLU over big lane-dense blocks."""
    y = y_ref[...].astype(jnp.float32)
    o_ref[...] = jnp.maximum(y * sc_ref[...] + sh_ref[...], 0.0).astype(o_ref.dtype)


# ----------------------------------------------------------------------------- helpers
def _toeplitz_weights(w_oihw, W):
    """(Cout, Cin, 3, 3) -> (3, W*Cin, W*Cout) block-Toeplitz matrices, one per dy tap.

    toe[dy][wj*Cin + ci, wi*Cout + co] = w[co, ci, dy, dx] with wj = wi + dx - 1;
    out-of-range dx taps (width edges, padding=1) are omitted, so the matmul consumes
    the *unpadded* lane-dense activation directly.
    """
    Cout, Cin, KH, KW = w_oihw.shape
    assert KH == 3 and KW == 3, "DoubleConvBlock spec uses kernel_size=3, padding=1"
    wt = jnp.transpose(w_oihw, (2, 3, 1, 0)).astype(jnp.float32)   # (dy, dx, Cin, Cout)
    mats = []
    for dy in range(KH):
        m = jnp.zeros((W * Cin, W * Cout), jnp.float32)
        for dx in range(KW):
            shift = jnp.eye(W, W, k=1 - dx, dtype=jnp.float32)     # in col = out col + dx - 1
            m = m + jnp.kron(shift, wt[dy, dx])
        mats.append(m)
    # TODO(synk): for UNet-scale channel counts, block this over 256-wide output lanes
    # (v6e/v7x MXU width) and K chunks instead of keeping it fully VMEM-resident.
    return jnp.stack(mats, axis=0)


def _bn_scale_shift(stats, gamma, beta, count, W, Cout):
    """Fold per-image (sum, sumsq) partials into lane-dense BN scale/shift rows."""
    # TODO(synk): for real (non-toy) activation magnitudes use shifted/centred partial
    # sums (Chan-style merge) instead of E[y^2]-E[y]^2 to avoid cancellation.
    s = jnp.sum(stats[:, 0, :], axis=0).reshape(W, Cout).sum(axis=0)   # per-channel sum
    q = jnp.sum(stats[:, 1, :], axis=0).reshape(W, Cout).sum(axis=0)   # per-channel sumsq
    mean = s / count
    var = jnp.maximum(q / count - mean * mean, 0.0)                    # biased variance
    scale_c = gamma.astype(jnp.float32) * lax.rsqrt(var + EPS)
    shift_c = beta.astype(jnp.float32) - mean * scale_c
    return (jnp.tile(scale_c, W).reshape(1, W * Cout),
            jnp.tile(shift_c, W).reshape(1, W * Cout))


def _row_tile(total, cap=1024):
    if total <= cap:
        return total
    for r in (1024, 512, 256, 128, 64, 32, 16, 8):
        if total % r == 0:
            return r
    return total


# ----------------------------------------------------------------------------- pallas calls
def _conv_stage(x_lane, w_toe, scale=None, shift=None, *, out_dtype=jnp.bfloat16):
    """One conv pass: (optional fused BN+ReLU on the input) -> 3x3 conv -> (y, per-image stats)."""
    N, H, Lin = x_lane.shape
    Lout = w_toe.shape[-1]
    fused = scale is not None

    in_specs = [
        pl.BlockSpec((1, H, Lin), lambda n: (n, 0, 0)),          # one image per grid step
        pl.BlockSpec((3, Lin, Lout), lambda n: (0, 0, 0)),       # Toeplitz weights (resident)
    ]
    inputs = [x_lane, w_toe]
    if fused:
        in_specs += [pl.BlockSpec((1, Lin), lambda n: (0, 0)),
                     pl.BlockSpec((1, Lin), lambda n: (0, 0))]
        inputs += [scale, shift]

    # TODO(synk): for images too large for whole-image VMEM residency, switch to row
    # tiles with a manual double-buffered halo DMA (memory_space=pl.ANY) instead.
    return pl.pallas_call(
        _make_conv_stats_kernel(fused),
        out_shape=(jax.ShapeDtypeStruct((N, H, Lout), out_dtype),
                   jax.ShapeDtypeStruct((N, 2, Lout), jnp.float32)),
        grid_spec=pltpu.PrefetchScalarGridSpec(
            num_scalar_prefetch=0,
            grid=(N,),
            in_specs=in_specs,
            out_specs=[pl.BlockSpec((1, H, Lout), lambda n: (n, 0, 0)),
                       pl.BlockSpec((1, 2, Lout), lambda n: (n, 0, 0))],
            scratch_shapes=[pltpu.VMEM((H + 2 * _PAD, Lin), jnp.float32)]),
        compiler_params=pltpu.CompilerParams(
            dimension_semantics=("parallel",),
            vmem_limit_bytes=_VMEM_LIMIT),
    )(*inputs)


def _bn_relu(y_flat, scale, shift, out_dtype=jnp.float32):
    R, L = y_flat.shape
    TR = _row_tile(R)
    return pl.pallas_call(
        _bn_relu_kernel,
        out_shape=jax.ShapeDtypeStruct((R, L), out_dtype),
        grid_spec=pltpu.PrefetchScalarGridSpec(
            num_scalar_prefetch=0,
            grid=(R // TR,),
            in_specs=[pl.BlockSpec((TR, L), lambda i: (i, 0)),
                      pl.BlockSpec((1, L), lambda i: (0, 0)),
                      pl.BlockSpec((1, L), lambda i: (0, 0))],
            out_specs=pl.BlockSpec((TR, L), lambda i: (i, 0))),
        compiler_params=pltpu.CompilerParams(
            dimension_semantics=("parallel",),
            vmem_limit_bytes=_VMEM_LIMIT),
    )(y_flat, scale, shift)


# ----------------------------------------------------------------------------- module
@jax.jit
def double_conv_block(x_nchw, params):
    """DoubleConvBlock forward: (N, Cin, H, W) -> (N, Cout, H, W)."""
    N, Cin, H, W = x_nchw.shape
    C1 = params["w1"].shape[0]
    C2 = params["w2"].shape[0]

    # NCHW -> lane-dense (N, H, W*Cin) bf16 (single fused XLA transpose+cast).
    x = jnp.transpose(x_nchw, (0, 2, 3, 1)).reshape(N, H, W * Cin).astype(jnp.bfloat16)
    w1 = _toeplitz_weights(params["w1"], W).astype(jnp.bfloat16)
    w2 = _toeplitz_weights(params["w2"], W).astype(jnp.bfloat16)
    cnt = float(N * H * W)

    # Stage 1, pass A: conv1 + BN1 partial statistics (bias dropped: cancels under BN).
    y1, st1 = _conv_stage(x, w1, out_dtype=jnp.bfloat16)
    sc1, sh1 = _bn_scale_shift(st1, params["g1"], params["beta1"], cnt, W, C1)

    # Stage 2, pass A: BN1 + ReLU fused into conv2's in-VMEM slab transform, + BN2 stats.
    y2, st2 = _conv_stage(y1, w2, sc1, sh1, out_dtype=jnp.bfloat16)
    sc2, sh2 = _bn_scale_shift(st2, params["g2"], params["beta2"], cnt, W, C2)

    # Final BN2 + ReLU over the flattened (N*H, W*C2) row space (lane-dense blocks).
    out = _bn_relu(y2.reshape(N * H, W * C2), sc2, sh2, out_dtype=jnp.float32)
    return jnp.transpose(out.reshape(N, H, W, C2), (0, 3, 1, 2))   # lane-dense -> NCHW


# ----------------------------------------------------------------------------- reference
def _reference(x_nchw, params):
    """Pure-JAX f32 reference (lax conv + bias + batch-stat BN + ReLU)."""

    def stage(x, w, b, g, beta):
        y = lax.conv_general_dilated(
            x, w, window_strides=(1, 1), padding=((1, 1), (1, 1)),
            dimension_numbers=("NCHW", "OIHW", "NCHW"))
        y = y + b.reshape(1, -1, 1, 1)
        mean = jnp.mean(y, axis=(0, 2, 3), keepdims=True)
        var = jnp.mean((y - mean) ** 2, axis=(0, 2, 3), keepdims=True)
        y = (y - mean) * lax.rsqrt(var + EPS)
        y = y * g.reshape(1, -1, 1, 1) + beta.reshape(1, -1, 1, 1)
        return jnp.maximum(y, 0.0)

    x = stage(x_nchw, params["w1"], params["b1"], params["g1"], params["beta1"])
    x = stage(x, params["w2"], params["b2"], params["g2"], params["beta2"])
    return x


if __name__ == "__main__":
    # DoubleConvBlock(in_channels=4, out_channels=8, kernel_size=3, padding=1, bias=True)
    N, Cin, H, W = 2, 4, 16, 16
    Cout = 8

    key = jax.random.PRNGKey(0)
    k_x, k_w1, k_b1, k_w2, k_b2 = jax.random.split(key, 5)

    x = jax.random.normal(k_x, (N, Cin, H, W), dtype=jnp.float32)

    params = {
        "w1": jax.random.normal(k_w1, (Cout, Cin, 3, 3), dtype=jnp.float32) * 0.1,
        "b1": jax.random.normal(k_b1, (Cout,), dtype=jnp.float32) * 0.1,
        "g1": jnp.ones((Cout,), jnp.float32),      # BatchNorm2d gamma init
        "beta1": jnp.zeros((Cout,), jnp.float32),  # BatchNorm2d beta init
        "w2": jax.random.normal(k_w2, (Cout, Cout, 3, 3), dtype=jnp.float32) * 0.1,
        "b2": jax.random.normal(k_b2, (Cout,), dtype=jnp.float32) * 0.1,
        "g2": jnp.ones((Cout,), jnp.float32),
        "beta2": jnp.zeros((Cout,), jnp.float32),
    }

    out = jax.block_until_ready(double_conv_block(x, params))
    assert out.shape == (N, Cout, H, W), out.shape

    ref = jax.block_until_ready(_reference(x, params))
    np.testing.assert_allclose(np.asarray(out), np.asarray(ref), rtol=5e-2, atol=5e-2)

    print("KERNEL_OK")
</pallas_src>

<mosaic_0001>
module attributes {stable_mosaic.version = 11 : i64} {
  func.func @kernel(%arg0: i32, %arg1: memref<1x16x64xbf16, #tpu.memory_space<vmem>>, %arg2: memref<3x64x128xbf16, #tpu.memory_space<vmem>>, %arg3: memref<1x16x128xbf16, #tpu.memory_space<vmem>>, %arg4: memref<1x2x128xf32, #tpu.memory_space<vmem>>, %arg5: memref<32x64xf32, #tpu.memory_space<vmem>>) attributes {dimension_semantics = [#tpu.dimension_semantics<parallel>], iteration_bounds = array<i64: 2>, scalar_prefetch = 0 : i64, scratch_operands = 1 : i64, tpu.core_type = #tpu.core_type<tc>, window_params = [{transform_indices = @transform_0, window_bounds = array<i64: 1, 16, 64>}, {pipeline_mode = #tpu.pipeline_mode<synchronous>, transform_indices = @transform_1, window_bounds = array<i64: 3, 64, 128>}, {transform_indices = @transform_2, window_bounds = array<i64: 1, 16, 128>}, {transform_indices = @transform_3, window_bounds = array<i64: 1, 2, 128>}]} {
    %c0 = arith.constant 0 : index
    %c0_0 = arith.constant 0 : index
    %c0_1 = arith.constant 0 : index
    %0 = vector.load %arg1[%c0, %c0_0, %c0_1] : memref<1x16x64xbf16, #tpu.memory_space<vmem>>, vector<1x16x64xbf16>
    %1 = vector.shape_cast %0 : vector<1x16x64xbf16> to vector<16x64xbf16>
    %2 = arith.extf %1 : vector<16x64xbf16> to vector<16x64xf32>
    %cst = arith.constant 0.000000e+00 : f32
    %3 = vector.broadcast %cst : f32 to vector<8x64xf32>
    %c0_2 = arith.constant 0 : index
    %c0_3 = arith.constant 0 : index
    %4 = vector.load %arg5[%c0_2, %c0_3] : memref<32x64xf32, #tpu.memory_space<vmem>>, vector<8x64xf32>
    tpu.vector_store %arg5[%c0_2, %c0_3], %3 {strides = array<i32>} : memref<32x64xf32, #tpu.memory_space<vmem>>, vector<8x64xf32>,
    %c24 = arith.constant 24 : index
    %c0_4 = arith.constant 0 : index
    %5 = vector.load %arg5[%c24, %c0_4] : memref<32x64xf32, #tpu.memory_space<vmem>>, vector<8x64xf32>
    tpu.vector_store %arg5[%c24, %c0_4], %3 {strides = array<i32>} : memref<32x64xf32, #tpu.memory_space<vmem>>, vector<8x64xf32>,
    %c8 = arith.constant 8 : index
    %c0_5 = arith.constant 0 : index
    %6 = vector.load %arg5[%c8, %c0_5] : memref<32x64xf32, #tpu.memory_space<vmem>>, vector<16x64xf32>
    tpu.vector_store %arg5[%c8, %c0_5], %2 {strides = array<i32>} : memref<32x64xf32, #tpu.memory_space<vmem>>, vector<16x64xf32>,
    %c7 = arith.constant 7 : index
    %c0_6 = arith.constant 0 : index
    %7 = vector.load %arg5[%c7, %c0_6] : memref<32x64xf32, #tpu.memory_space<vmem>>, vector<16x64xf32>
    %8 = arith.truncf %7 : vector<16x64xf32> to vector<16x64xbf16>
    %c0_7 = arith.constant 0 : index
    %c0_8 = arith.constant 0 : index
    %c0_9 = arith.constant 0 : index
    %9 = vector.load %arg2[%c0_7, %c0_8, %c0_9] : memref<3x64x128xbf16, #tpu.memory_space<vmem>>, vector<1x64x128xbf16>
    %10 = vector.shape_cast %9 : vector<1x64x128xbf16> to vector<64x128xbf16>
    %cst_10 = arith.constant dense<0.000000e+00> : vector<16x128xf32>
    %11 = tpu.matmul %8, %10, %cst_10 {dimension_numbers = #tpu.dot_dimension_numbers<[1], [0], [0], [1], [0, 0, 1, 1], [], []>} : vector<16x64xbf16>, vector<64x128xbf16>, vector<16x128xf32> -> vector<16x128xf32>
    %c8_11 = arith.constant 8 : index
    %c0_12 = arith.constant 0 : index
    %12 = vector.load %arg5[%c8_11, %c0_12] : memref<32x64xf32, #tpu.memory_space<vmem>>, vector<16x64xf32>
    %13 = arith.truncf %12 : vector<16x64xf32> to vector<16x64xbf16>
    %c1 = arith.constant 1 : index
    %c0_13 = arith.constant 0 : index
    %c0_14 = arith.constant 0 : index
    %14 = vector.load %arg2[%c1, %c0_13, %c0_14] : memref<3x64x128xbf16, #tpu.memory_space<vmem>>, vector<1x64x128xbf16>
    %15 = vector.shape_cast %14 : vector<1x64x128xbf16> to vector<64x128xbf16>
    %cst_15 = arith.constant dense<0.000000e+00> : vector<16x128xf32>
    %16 = tpu.matmul %13, %15, %cst_15 {dimension_numbers = #tpu.dot_dimension_numbers<[1], [0], [0], [1], [0, 0, 1, 1], [], []>} : vector<16x64xbf16>, vector<64x128xbf16>, vector<16x128xf32> -> vector<16x128xf32>
    %17 = arith.addf %11, %16 : vector<16x128xf32>
    %c9 = arith.constant 9 : index
    %c0_16 = arith.constant 0 : index
    %18 = vector.load %arg5[%c9, %c0_16] : memref<32x64xf32, #tpu.memory_space<vmem>>, vector<16x64xf32>
    %19 = arith.truncf %18 : vector<16x64xf32> to vector<16x64xbf16>
    %c2 = arith.constant 2 : index
    %c0_17 = arith.constant 0 : index
    %c0_18 = arith.constant 0 : index
    %20 = vector.load %arg2[%c2, %c0_17, %c0_18] : memref<3x64x128xbf16, #tpu.memory_space<vmem>>, vector<1x64x128xbf16>
    %21 = vector.shape_cast %20 : vector<1x64x128xbf16> to vector<64x128xbf16>
    %cst_19 = arith.constant dense<0.000000e+00> : vector<16x128xf32>
    %22 = tpu.matmul %19, %21, %cst_19 {dimension_numbers = #tpu.dot_dimension_numbers<[1], [0], [0], [1], [0, 0, 1, 1], [], []>} : vector<16x64xbf16>, vector<64x128xbf16>, vector<16x128xf32> -> vector<16x128xf32>
    %23 = arith.addf %17, %22 : vector<16x128xf32>
    %24 = arith.truncf %23 : vector<16x128xf32> to vector<16x128xbf16>
    %c0_20 = arith.constant 0 : index
    %c0_21 = arith.constant 0 : index
    %c0_22 = arith.constant 0 : index
    %25 = vector.load %arg3[%c0_20, %c0_21, %c0_22] : memref<1x16x128xbf16, #tpu.memory_space<vmem>>, vector<1x16x128xbf16>
    %26 = vector.shape_cast %25 : vector<1x16x128xbf16> to vector<16x128xbf16>
    %27 = vector.shape_cast %24 : vector<16x128xbf16> to vector<1x16x128xbf16>
    tpu.vector_store %arg3[%c0_20, %c0_21, %c0_22], %27 {strides = array<i32>} : memref<1x16x128xbf16, #tpu.memory_space<vmem>>, vector<1x16x128xbf16>,
    %cst_23 = arith.constant dense<0.000000e+00> : vector<128xf32>
    %28 = vector.multi_reduction <add>, %23, %cst_23 [0] : vector<16x128xf32> to vector<128xf32>
    %29 = vector.shape_cast %28 : vector<128xf32> to vector<1x128xf32>
    %30 = arith.mulf %23, %23 : vector<16x128xf32>
    %cst_24 = arith.constant dense<0.000000e+00> : vector<128xf32>
    %31 = vector.multi_reduction <add>, %30, %cst_24 [0] : vector<16x128xf32> to vector<128xf32>
    %32 = vector.shape_cast %31 : vector<128xf32> to vector<1x128xf32>
    %33 = tpu.concatenate %29, %32 in 0 : vector<1x128xf32>, vector<1x128xf32> -> vector<2x128xf32>
    %c0_25 = arith.constant 0 : index
    %c0_26 = arith.constant 0 : index
    %c0_27 = arith.constant 0 : index
    %34 = vector.load %arg4[%c0_25, %c0_26, %c0_27] : memref<1x2x128xf32, #tpu.memory_space<vmem>>, vector<1x2x128xf32>
    %35 = vector.shape_cast %34 : vector<1x2x128xf32> to vector<2x128xf32>
    %36 = vector.shape_cast %33 : vector<2x128xf32> to vector<1x2x128xf32>
    tpu.vector_store %arg4[%c0_25, %c0_26, %c0_27], %36 {strides = array<i32>} : memref<1x2x128xf32, #tpu.memory_space<vmem>>, vector<1x2x128xf32>,
    return
  }
  func.func @transform_0(%arg0: i32) -> (i32, i32, i32) {
    %c0_i32 = arith.constant 0 : i32
    %c0_i32_0 = arith.constant 0 : i32
    %c0_i32_1 = arith.constant 0 : i32
    return %arg0, %c0_i32, %c0_i32_0 : i32, i32, i32
  }
  func.func @transform_1(%arg0: i32) -> (i32, i32, i32) {
    %c0_i32 = arith.constant 0 : i32
    %c0_i32_0 = arith.constant 0 : i32
    %c0_i32_1 = arith.constant 0 : i32
    %c0_i32_2 = arith.constant 0 : i32
    return %c0_i32, %c0_i32_0, %c0_i32_1 : i32, i32, i32
  }
  func.func @transform_2(%arg0: i32) -> (i32, i32, i32) {
    %c0_i32 = arith.constant 0 : i32
    %c0_i32_0 = arith.constant 0 : i32
    %c0_i32_1 = arith.constant 0 : i32
    return %arg0, %c0_i32, %c0_i32_0 : i32, i32, i32
  }
  func.func @transform_3(%arg0: i32) -> (i32, i32, i32) {
    %c0_i32 = arith.constant 0 : i32
    %c0_i32_0 = arith.constant 0 : i32
    %c0_i32_1 = arith.constant 0 : i32
    return %arg0, %c0_i32, %c0_i32_0 : i32, i32, i32
  }
}

module attributes {stable_mosaic.version = 11 : i64} {
  func.func @kernel(%arg0: i32, %arg1: memref<1x16x128xbf16, #tpu.memory_space<vmem>>, %arg2: memref<3x128x128xbf16, #tpu.memory_space<vmem>>, %arg3: memref<1x128xf32, #tpu.memory_space<vmem>>, %arg4: memref<1x128xf32, #tpu.memory_space<vmem>>, %arg5: memref<1x16x128xbf16, #tpu.memory_space<vmem>>, %arg6: memref<1x2x128xf32, #tpu.memory_space<vmem>>, %arg7: memref<32x128xf32, #tpu.memory_space<vmem>>) attributes {dimension_semantics = [#tpu.dimension_semantics<parallel>], iteration_bounds = array<i64: 2>, scalar_prefetch = 0 : i64, scratch_operands = 1 : i64, tpu.core_type = #tpu.core_type<tc>, window_params = [{transform_indices = @transform_0, window_bounds = array<i64: 1, 16, 128>}, {pipeline_mode = #tpu.pipeline_mode<synchronous>, transform_indices = @transform_1, window_bounds = array<i64: 3, 128, 128>}, {pipeline_mode = #tpu.pipeline_mode<synchronous>, transform_indices = @transform_2, window_bounds = array<i64: 1, 128>}, {pipeline_mode = #tpu.pipeline_mode<synchronous>, transform_indices = @transform_3, window_bounds = array<i64: 1, 128>}, {transform_indices = @transform_4, window_bounds = array<i64: 1, 16, 128>}, {transform_indices = @transform_5, window_bounds = array<i64: 1, 2, 128>}]} {
    %c0 = arith.constant 0 : index
    %c0_0 = arith.constant 0 : index
    %c0_1 = arith.constant 0 : index
    %0 = vector.load %arg1[%c0, %c0_0, %c0_1] : memref<1x16x128xbf16, #tpu.memory_space<vmem>>, vector<1x16x128xbf16>
    %1 = vector.shape_cast %0 : vector<1x16x128xbf16> to vector<16x128xbf16>
    %2 = arith.extf %1 : vector<16x128xbf16> to vector<16x128xf32>
    %c0_2 = arith.constant 0 : index
    %c0_3 = arith.constant 0 : index
    %3 = vector.load %arg3[%c0_2, %c0_3] : memref<1x128xf32, #tpu.memory_space<vmem>>, vector<1x128xf32>
    %4 = vector.broadcast %3 : vector<1x128xf32> to vector<16x128xf32>
    %5 = arith.mulf %2, %4 : vector<16x128xf32>
    %c0_4 = arith.constant 0 : index
    %c0_5 = arith.constant 0 : index
    %6 = vector.load %arg4[%c0_4, %c0_5] : memref<1x128xf32, #tpu.memory_space<vmem>>, vector<1x128xf32>
    %7 = vector.broadcast %6 : vector<1x128xf32> to vector<16x128xf32>
    %8 = arith.addf %5, %7 : vector<16x128xf32>
    %cst = arith.constant 0.000000e+00 : f32
    %9 = vector.broadcast %cst : f32 to vector<16x128xf32>
    %10 = arith.maximumf %8, %9 : vector<16x128xf32>
    %cst_6 = arith.constant 0.000000e+00 : f32
    %11 = vector.broadcast %cst_6 : f32 to vector<8x128xf32>
    %c0_7 = arith.constant 0 : index
    %c0_8 = arith.constant 0 : index
    %12 = vector.load %arg7[%c0_7, %c0_8] : memref<32x128xf32, #tpu.memory_space<vmem>>, vector<8x128xf32>
    tpu.vector_store %arg7[%c0_7, %c0_8], %11 {strides = array<i32>} : memref<32x128xf32, #tpu.memory_space<vmem>>, vector<8x128xf32>,
    %c24 = arith.constant 24 : index
    %c0_9 = arith.constant 0 : index
    %13 = vector.load %arg7[%c24, %c0_9] : memref<32x128xf32, #tpu.memory_space<vmem>>, vector<8x128xf32>
    tpu.vector_store %arg7[%c24, %c0_9], %11 {strides = array<i32>} : memref<32x128xf32, #tpu.memory_space<vmem>>, vector<8x128xf32>,
    %c8 = arith.constant 8 : index
    %c0_10 = arith.constant 0 : index
    %14 = vector.load %arg7[%c8, %c0_10] : memref<32x128xf32, #tpu.memory_space<vmem>>, vector<16x128xf32>
    tpu.vector_store %arg7[%c8, %c0_10], %10 {strides = array<i32>} : memref<32x128xf32, #tpu.memory_space<vmem>>, vector<16x128xf32>,
    %c7 = arith.constant 7 : index
    %c0_11 = arith.constant 0 : index
    %15 = vector.load %arg7[%c7, %c0_11] : memref<32x128xf32, #tpu.memory_space<vmem>>, vector<16x128xf32>
    %16 = arith.truncf %15 : vector<16x128xf32> to vector<16x128xbf16>
    %c0_12 = arith.constant 0 : index
    %c0_13 = arith.constant 0 : index
    %c0_14 = arith.constant 0 : index
    %17 = vector.load %arg2[%c0_12, %c0_13, %c0_14] : memref<3x128x128xbf16, #tpu.memory_space<vmem>>, vector<1x128x128xbf16>
    %18 = vector.shape_cast %17 : vector<1x128x128xbf16> to vector<128x128xbf16>
    %cst_15 = arith.constant dense<0.000000e+00> : vector<16x128xf32>
    %19 = tpu.matmul %16, %18, %cst_15 {dimension_numbers = #tpu.dot_dimension_numbers<[1], [0], [0], [1], [0, 0, 1, 1], [], []>} : vector<16x128xbf16>, vector<128x128xbf16>, vector<16x128xf32> -> vector<16x128xf32>
    %c8_16 = arith.constant 8 : index
    %c0_17 = arith.constant 0 : index
    %20 = vector.load %arg7[%c8_16, %c0_17] : memref<32x128xf32, #tpu.memory_space<vmem>>, vector<16x128xf32>
    %21 = arith.truncf %20 : vector<16x128xf32> to vector<16x128xbf16>
    %c1 = arith.constant 1 : index
    %c0_18 = arith.constant 0 : index
    %c0_19 = arith.constant 0 : index
    %22 = vector.load %arg2[%c1, %c0_18, %c0_19] : memref<3x128x128xbf16, #tpu.memory_space<vmem>>, vector<1x128x128xbf16>
    %23 = vector.shape_cast %22 : vector<1x128x128xbf16> to vector<128x128xbf16>
    %cst_20 = arith.constant dense<0.000000e+00> : vector<16x128xf32>
    %24 = tpu.matmul %21, %23, %cst_20 {dimension_numbers = #tpu.dot_dimension_numbers<[1], [0], [0], [1], [0, 0, 1, 1], [], []>} : vector<16x128xbf16>, vector<128x128xbf16>, vector<16x128xf32> -> vector<16x128xf32>
    %25 = arith.addf %19, %24 : vector<16x128xf32>
    %c9 = arith.constant 9 : index
    %c0_21 = arith.constant 0 : index
    %26 = vector.load %arg7[%c9, %c0_21] : memref<32x128xf32, #tpu.memory_space<vmem>>, vector<16x128xf32>
    %27 = arith.truncf %26 : vector<16x128xf32> to vector<16x128xbf16>
    %c2 = arith.constant 2 : index
    %c0_22 = arith.constant 0 : index
    %c0_23 = arith.constant 0 : index
    %28 = vector.load %arg2[%c2, %c0_22, %c0_23] : memref<3x128x128xbf16, #tpu.memory_space<vmem>>, vector<1x128x128xbf16>
    %29 = vector.shape_cast %28 : vector<1x128x128xbf16> to vector<128x128xbf16>
    %cst_24 = arith.constant dense<0.000000e+00> : vector<16x128xf32>
    %30 = tpu.matmul %27, %29, %cst_24 {dimension_numbers = #tpu.dot_dimension_numbers<[1], [0], [0], [1], [0, 0, 1, 1], [], []>} : vector<16x128xbf16>, vector<128x128xbf16>, vector<16x128xf32> -> vector<16x128xf32>
    %31 = arith.addf %25, %30 : vector<16x128xf32>
    %32 = arith.truncf %31 : vector<16x128xf32> to vector<16x128xbf16>
    %c0_25 = arith.constant 0 : index
    %c0_26 = arith.constant 0 : index
    %c0_27 = arith.constant 0 : index
    %33 = vector.load %arg5[%c0_25, %c0_26, %c0_27] : memref<1x16x128xbf16, #tpu.memory_space<vmem>>, vector<1x16x128xbf16>
    %34 = vector.shape_cast %33 : vector<1x16x128xbf16> to vector<16x128xbf16>
    %35 = vector.shape_cast %32 : vector<16x128xbf16> to vector<1x16x128xbf16>
    tpu.vector_store %arg5[%c0_25, %c0_26, %c0_27], %35 {strides = array<i32>} : memref<1x16x128xbf16, #tpu.memory_space<vmem>>, vector<1x16x128xbf16>,
    %cst_28 = arith.constant dense<0.000000e+00> : vector<128xf32>
    %36 = vector.multi_reduction <add>, %31, %cst_28 [0] : vector<16x128xf32> to vector<128xf32>
    %37 = vector.shape_cast %36 : vector<128xf32> to vector<1x128xf32>
    %38 = arith.mulf %31, %31 : vector<16x128xf32>
    %cst_29 = arith.constant dense<0.000000e+00> : vector<128xf32>
    %39 = vector.multi_reduction <add>, %38, %cst_29 [0] : vector<16x128xf32> to vector<128xf32>
    %40 = vector.shape_cast %39 : vector<128xf32> to vector<1x128xf32>
    %41 = tpu.concatenate %37, %40 in 0 : vector<1x128xf32>, vector<1x128xf32> -> vector<2x128xf32>
    %c0_30 = arith.constant 0 : index
    %c0_31 = arith.constant 0 : index
    %c0_32 = arith.constant 0 : index
    %42 = vector.load %arg6[%c0_30, %c0_31, %c0_32] : memref<1x2x128xf32, #tpu.memory_space<vmem>>, vector<1x2x128xf32>
    %43 = vector.shape_cast %42 : vector<1x2x128xf32> to vector<2x128xf32>
    %44 = vector.shape_cast %41 : vector<2x128xf32> to vector<1x2x128xf32>
    tpu.vector_store %arg6[%c0_30, %c0_31, %c0_32], %44 {strides = array<i32>} : memref<1x2x128xf32, #tpu.memory_space<vmem>>, vector<1x2x128xf32>,
    return
  }
  func.func @transform_0(%arg0: i32) -> (i32, i32, i32) {
    %c0_i32 = arith.constant 0 : i32
    %c0_i32_0 = arith.constant 0 : i32
    %c0_i32_1 = arith.constant 0 : i32
    return %arg0, %c0_i32, %c0_i32_0 : i32, i32, i32
  }
  func.func @transform_1(%arg0: i32) -> (i32, i32, i32) {
    %c0_i32 = arith.constant 0 : i32
    %c0_i32_0 = arith.constant 0 : i32
    %c0_i32_1 = arith.constant 0 : i32
    %c0_i32_2 = arith.constant 0 : i32
    return %c0_i32, %c0_i32_0, %c0_i32_1 : i32, i32, i32
  }
  func.func @transform_2(%arg0: i32) -> (i32, i32) {
    %c0_i32 = arith.constant 0 : i32
    %c0_i32_0 = arith.constant 0 : i32
    %c0_i32_1 = arith.constant 0 : i32
    return %c0_i32, %c0_i32_0 : i32, i32
  }
  func.func @transform_3(%arg0: i32) -> (i32, i32) {
    %c0_i32 = arith.constant 0 : i32
    %c0_i32_0 = arith.constant 0 : i32
    %c0_i32_1 = arith.constant 0 : i32
    return %c0_i32, %c0_i32_0 : i32, i32
  }
  func.func @transform_4(%arg0: i32) -> (i32, i32, i32) {
    %c0_i32 = arith.constant 0 : i32
    %c0_i32_0 = arith.constant 0 : i32
    %c0_i32_1 = arith.constant 0 : i32
    return %arg0, %c0_i32, %c0_i32_0 : i32, i32, i32
  }
  func.func @transform_5(%arg0: i32) -> (i32, i32, i32) {
    %c0_i32 = arith.constant 0 : i32
    %c0_i32_0 = arith.constant 0 : i32
    %c0_i32_1 = arith.constant 0 : i32
    return %arg0, %c0_i32, %c0_i32_0 : i32, i32, i32
  }
}

module attributes {stable_mosaic.version = 11 : i64} {
  func.func @_bn_relu_kernel(%arg0: i32, %arg1: memref<32x128xbf16, #tpu.memory_space<vmem>>, %arg2: memref<1x128xf32, #tpu.memory_space<vmem>>, %arg3: memref<1x128xf32, #tpu.memory_space<vmem>>, %arg4: memref<32x128xf32, #tpu.memory_space<vmem>>) attributes {dimension_semantics = [#tpu.dimension_semantics<parallel>], iteration_bounds = array<i64: 1>, scalar_prefetch = 0 : i64, scratch_operands = 0 : i64, tpu.core_type = #tpu.core_type<tc>, window_params = [{transform_indices = @transform_0, window_bounds = array<i64: 32, 128>}, {pipeline_mode = #tpu.pipeline_mode<synchronous>, transform_indices = @transform_1, window_bounds = array<i64: 1, 128>}, {pipeline_mode = #tpu.pipeline_mode<synchronous>, transform_indices = @transform_2, window_bounds = array<i64: 1, 128>}, {transform_indices = @transform_3, window_bounds = array<i64: 32, 128>}]} {
    %c0 = arith.constant 0 : index
    %c0_0 = arith.constant 0 : index
    %0 = vector.load %arg1[%c0, %c0_0] : memref<32x128xbf16, #tpu.memory_space<vmem>>, vector<32x128xbf16>
    %1 = arith.extf %0 : vector<32x128xbf16> to vector<32x128xf32>
    %c0_1 = arith.constant 0 : index
    %c0_2 = arith.constant 0 : index
    %2 = vector.load %arg2[%c0_1, %c0_2] : memref<1x128xf32, #tpu.memory_space<vmem>>, vector<1x128xf32>
    %3 = vector.broadcast %2 : vector<1x128xf32> to vector<32x128xf32>
    %4 = arith.mulf %1, %3 : vector<32x128xf32>
    %c0_3 = arith.constant 0 : index
    %c0_4 = arith.constant 0 : index
    %5 = vector.load %arg3[%c0_3, %c0_4] : memref<1x128xf32, #tpu.memory_space<vmem>>, vector<1x128xf32>
    %6 = vector.broadcast %5 : vector<1x128xf32> to vector<32x128xf32>
    %7 = arith.addf %4, %6 : vector<32x128xf32>
    %cst = arith.constant 0.000000e+00 : f32
    %8 = vector.broadcast %cst : f32 to vector<32x128xf32>
    %9 = arith.maximumf %7, %8 : vector<32x128xf32>
    %c0_5 = arith.constant 0 : index
    %c0_6 = arith.constant 0 : index
    %10 = vector.load %arg4[%c0_5, %c0_6] : memref<32x128xf32, #tpu.memory_space<vmem>>, vector<32x128xf32>
    tpu.vector_store %arg4[%c0_5, %c0_6], %9 {strides = array<i32>} : memref<32x128xf32, #tpu.memory_space<vmem>>, vector<32x128xf32>,
    return
  }
  func.func @transform_0(%arg0: i32) -> (i32, i32) {
    %c0_i32 = arith.constant 0 : i32
    %c0_i32_0 = arith.constant 0 : i32
    return %arg0, %c0_i32 : i32, i32
  }
  func.func @transform_1(%arg0: i32) -> (i32, i32) {
    %c0_i32 = arith.constant 0 : i32
    %c0_i32_0 = arith.constant 0 : i32
    %c0_i32_1 = arith.constant 0 : i32
    return %c0_i32, %c0_i32_0 : i32, i32
  }
  func.func @transform_2(%arg0: i32) -> (i32, i32) {
    %c0_i32 = arith.constant 0 : i32
    %c0_i32_0 = arith.constant 0 : i32
    %c0_i32_1 = arith.constant 0 : i32
    return %c0_i32, %c0_i32_0 : i32, i32
  }
  func.func @transform_3(%arg0: i32) -> (i32, i32) {
    %c0_i32 = arith.constant 0 : i32
    %c0_i32_0 = arith.constant 0 : i32
    return %arg0, %c0_i32 : i32, i32
  }
}

</mosaic_0001>

<bundles_post_ra>
// kernel: tile.23
= control target key start
LH: loop header
LB: loop body
LE: loop exit
PB: predicated region body
PF: predicated region fallthrough
CT: control target
= control target key end

     0   :  { %s28_s0 = inlined_call_operand.vmem [shape: f32[8], index: 0, kind: input, shape index: {}]   ;;  %s29_s1 = inlined_call_operand.vmem [shape: f32[16,8], index: 1, kind: output, shape index: {}]  }
   0x1   :  { %v4_v0 = vld [vmem:[%s28_s0] ss:$0 sm:$0xff] }
   0x2   :  { %5 = vst [vmem:[%s29_s1] sm:$0xff] %v4_v0 }
   0x3   :  { %8 = vst [vmem:[%s29_s1 + $0x8] sm:$0xff] %v4_v0 }

// kernel: tile.24
= control target key start
LH: loop header
LB: loop body
LE: loop exit
PB: predicated region body
PF: predicated region fallthrough
CT: control target
= control target key end

     0   :  { %s131_s10 = smov 120   ;;  %s132_s11 = smov 104   ;;  %vm3_vm0 = vcmask 64512   ;;  %vm9_vm1 = vcmask 1048512   ;;  %vm15_vm2 = vcmask 982912   ;;  %vm21_vm3 = vcmask 917312   ;;  %s207_s0 = inlined_call_operand.vmem [shape: f32[16,8], index: 0, kind: input, shape index: {}]   ;;  %s208_s1 = inlined_call_operand.vmem [shape: f32[1,128], index: 1, kind: output, shape index: {}]  }
   0x1   :  { %v101_v0 = vld [vmem:[%s207_s0 + $0xf] sm:$0x1]   ;;  %v103_v1 = vld [vmem:[%s207_s0 + $0xd] sm:$0x1]   ;;  %v105_v2 = vld [vmem:[%s207_s0 + $0xb] sm:$0x1]  }
   0x2   :  { %7 = vrot.lane.b32.xlu0 %v101_v0, %s131_s10  ;;  %19 = vrot.lane.b32.xlu1 %v103_v1, %s132_s11  ;;  %s133_s14 = smov 88   ;;  %v102_v3 = vld [vmem:[%s207_s0 + $0xe] sm:$0x1]   ;;  %v104_v4 = vld [vmem:[%s207_s0 + $0xc] sm:$0x1]   ;;  %s134_s19 = smov 112  }
   0x3   :  { %31 = vrot.lane.b32.xlu2 %v105_v2, %s133_s14  ;;  %s135_s20 = smov 96   ;;  %v106_v5 = vld [vmem:[%s207_s0 + $0xa] sm:$0x1]   ;;  %s136_s23 = smov 80   ;;  %v107_v6 = vld [vmem:[%s207_s0 + $0x9] sm:$0x1]  }
   0x4   :  { %v108_v7 = vld [vmem:[%s207_s0 + $0x8] sm:$0x1]   ;;  %s137_s28 = smov 72   ;;  %s138_s29 = smov 64   ;;  %v109_v8 = vld [vmem:[%s207_s0 + $0x7] sm:$0x1]  }
   0x5   :  { %s139_s3 = smov 56   ;;  %v110_v9 = vld [vmem:[%s207_s0 + $0x6] sm:$0x1]   ;;  %v111_v10 = vld [vmem:[%s207_s0 + $0x5] sm:$0x1]   ;;  %s140_s8 = smov 48  }
   0x6   :  { %s141_s9 = smov 40   ;;  %v112_v11 = vld [vmem:[%s207_s0 + $0x4] sm:$0x1]   ;;  %s142_s12 = smov 32   ;;  %v113_v12 = vld [vmem:[%s207_s0 + $0x3] sm:$0x1]  }
   0x7   :  { %v114_v13 = vld [vmem:[%s207_s0 + $0x2] sm:$0x1]   ;;  %s143_s17 = smov 24   ;;  %s144_s18 = smov 16   ;;  %v115_v14 = vld [vmem:[%s207_s0 + $0x1] sm:$0x1]  }
   0x8   :  { %s145_s21 = smov 8   ;;  %v2_v15 = vld [vmem:[%s207_s0] sm:$0x1]   ;;  %vm27_vm4 = vcmask 851712   ;;  %vm33_vm5 = vcmask 786112   ;;  %vm39_vm6 = vcmask 720512  }
   0x9   :  { %4 = vst.msk [vmem:[#allocation0] sm:$0x1] %vm3_vm0, %v2_v15   ;;  %vm45_vm7 = vcmask 654912   ;;  %vm51_vm8 = vcmask 589312   ;;  %vm57_vm9 = vcmask 523712   ;;  %vm63_vm10 = vcmask 458112  }
   0xa   :  { %13 = vrot.lane.b32.xlu0 %v102_v3, %s134_s19  ;;  %25 = vrot.lane.b32.xlu1 %v104_v4, %s135_s20  ;;  %vm69_vm11 = vcmask 392512   ;;  %vm75_vm12 = vcmask 326912   ;;  %vm81_vm13 = vcmask 261312   ;;  %vm87_vm14 = vcmask 195712  }
   0xb   :  { %37 = vrot.lane.b32.xlu2 %v106_v5, %s136_s23  ;;  %vm93_vm15 = vcmask 130112  }
  0x12   :  { %43 = vrot.lane.b32.xlu0 %v107_v6, %s137_s28  ;;  %49 = vrot.lane.b32.xlu1 %v108_v7, %s138_s29 }
  0x13   :  { %55 = vrot.lane.b32.xlu2 %v109_v8, %s139_s3 }
  0x1a   :  { %61 = vrot.lane.b32.xlu0 %v110_v9, %s140_s8  ;;  %67 = vrot.lane.b32.xlu1 %v111_v10, %s141_s9 }
  0x1b   :  { %73 = vrot.lane.b32.xlu2 %v112_v11, %s142_s12 }
  0x22   :  { %79 = vrot.lane.b32.xlu0 %v113_v12, %s143_s17  ;;  %85 = vrot.lane.b32.xlu1 %v114_v13, %s144_s18 }
  0x23   :  { %91 = vrot.lane.b32.xlu2 %v115_v14, %s145_s21 }
  0x5d   :  { %v32_v16 = vpop.permute.xlu2 %31  }
  0x65   :  { %v38_v17 = vpop.permute.xlu2 %37  }
  0x6d   :  { %v56_v18 = vpop.permute.xlu2 %55  }
  0x74   :  { %v8_v19 = vpop.permute.xlu0 %7   ;;  %v20_v20 = vpop.permute.xlu1 %19  }
  0x75   :  { %10 = vst.msk [vmem:[#allocation0] sm:$0x1] %vm9_vm1, %v8_v19   ;;  %v74_v21 = vpop.permute.xlu2 %73  }
  0x7c   :  { %v14_v22 = vpop.permute.xlu0 %13   ;;  %v26_v23 = vpop.permute.xlu1 %25  }
  0x7d   :  { %16 = vst.msk [vmem:[#allocation0] sm:$0x1] %vm15_vm2, %v14_v22   ;;  %v92_v24 = vpop.permute.xlu2 %91  }
  0x7e   :  { %22 = vst.msk [vmem:[#allocation0] sm:$0x1] %vm21_vm3, %v20_v20  }
  0x7f   :  { %28 = vst.msk [vmem:[#allocation0] sm:$0x1] %vm27_vm4, %v26_v23  }
  0x80   :  { %34 = vst.msk [vmem:[#allocation0] sm:$0x1] %vm33_vm5, %v32_v16  }
  0x81   :  { %40 = vst.msk [vmem:[#allocation0] sm:$0x1] %vm39_vm6, %v38_v17  }
  0x84   :  { %v44_v25 = vpop.permute.xlu0 %43   ;;  %v50_v26 = vpop.permute.xlu1 %49  }
  0x85   :  { %46 = vst.msk [vmem:[#allocation0] sm:$0x1] %vm45_vm7, %v44_v25  }
  0x86   :  { %52 = vst.msk [vmem:[#allocation0] sm:$0x1] %vm51_vm8, %v50_v26  }
  0x87   :  { %58 = vst.msk [vmem:[#allocation0] sm:$0x1] %vm57_vm9, %v56_v18  }
  0x8c   :  { %v62_v27 = vpop.permute.xlu0 %61   ;;  %v68_v28 = vpop.permute.xlu1 %67  }
  0x8d   :  { %64 = vst.msk [vmem:[#allocation0] sm:$0x1] %vm63_vm10, %v62_v27  }
  0x8e   :  { %70 = vst.msk [vmem:[#allocation0] sm:$0x1] %vm69_vm11, %v68_v28  }
  0x8f   :  { %76 = vst.msk [vmem:[#allocation0] sm:$0x1] %vm75_vm12, %v74_v21  }
  0x94   :  { %v80_v29 = vpop.permute.xlu0 %79   ;;  %v86_v30 = vpop.permute.xlu1 %85  }
  0x95   :  { %82 = vst.msk [vmem:[#allocation0] sm:$0x1] %vm81_vm13, %v80_v29  }
  0x96   :  { %88 = vst.msk [vmem:[#allocation0] sm:$0x1] %vm87_vm14, %v86_v30  }
  0x97   :  { %94 = vst.msk [vmem:[#allocation0] sm:$0x1] %vm93_vm15, %v92_v24  }
  0x9e   :  { %v97_v31 = vld [vmem:[#allocation0] sm:$0x1] }
  0x9f   :  { %100 = vst [vmem:[%s208_s1] sm:$0x1] %v97_v31 }

// kernel: double_conv_block.3
= control target key start
LH: loop header
LB: loop body
LE: loop exit
PB: predicated region body
PF: predicated region fallthrough
CT: control target
= control target key end

     0   :  { %s601_s12 = smov 0   ;;  %s672_s0 = inlined_call_operand.vmem [shape: bf16[2,16,64], index: 0, kind: input, shape index: {}]   ;;  %s673_s1 = inlined_call_operand.vmem [shape: bf16[3,64,128], index: 1, kind: input, shape index: {}]   ;;  %s674_s2 = inlined_call_operand.vmem [shape: bf16[2,16,128], index: 2, kind: output, shape index: {0}]   ;;  %s675_s3 = inlined_call_operand.vmem [shape: f32[2,2,128], index: 3, kind: output, shape index: {1}]  }
   0x1 LB: > { %s461_s13 = sadd.s32 4294967295, %s578_s12   ;;  %p465_p0 = scmp.ge.s32.totalorder %s578_s12, 1  ;;  %s578_s12 = sphi %s601_s12, %s14_s12  }
   0x2   : > { %p140_p1 = scmp.lt.s32.totalorder %s578_s12, 3 }
   0x4   : > { %p141_p2 = pnand %p465_p0, %p140_p1 }
   0x5   : > { %p168_p3 = scmp.lt.s32.totalorder (!%p141_p2), %s461_s13, 1 }
   0x6   : > { %144 = sbr.rel (%p141_p2) target bundleno = 190 (0xbe), region = 28 }
   0xb   : > { %v549_v0 = vld [vmem:[%s673_s1 + $0x38] sm:$0xff]  ;;  %vm187_vm0 = vcmask 523264   ;;  %v580_v3 = vmov 0.0   ;;  %v548_v4 = vld [vmem:[%s673_s1 + $0x30] sm:$0xff]  ;;  %s677_s13 = smov (!%p168_p3, %s461_s13), 1  ;;  %v547_v7 = vld [vmem:[%s673_s1 + $0x28] sm:$0xff] }
   0xc   : > { %v545_v1 = vld [vmem:[%s673_s1 + $0x18] sm:$0xff]  ;;  %188 = vst.msk [vmem:[#allocation2] sm:$0xff] %vm187_vm0, %v580_v3  ;;  %246 = vmatpush.bf16.msra.mxu0 %v549_v0  ;;  %v544_v5 = vld [vmem:[%s673_s1 + $0x10] sm:$0xff]  ;;  %s540_s26 = sshll.u32 %s677_s13, 3  ;;  %v543_v8 = vld [vmem:[%s673_s1 + $0x8] sm:$0xff]  ;;  %s470_s20 = sshll.u32 %s677_s13, 1 }
   0xd   : > { %v553_v2 = vld [vmem:[%s673_s1 + $0x58] sm:$0xff]  ;;  %287 = vmatpush.bf16.msra.mxu1 %v545_v1  ;;  %189 = vst.msk [vmem:[#allocation2 + $0x18] sm:$0xff] %vm187_vm0, %v580_v3  ;;  %v552_v6 = vld [vmem:[%s673_s1 + $0x50] sm:$0xff]  ;;  %s172_s29 = scalar_lea.vmem %s672_s0, %s540_s26  ;;  %v551_v10 = vld [vmem:[%s673_s1 + $0x48] sm:$0xff]  ;;  %s177_s19 = scalar_lea.vmem %s674_s2, %s540_s26  ;;  %vm372_vm1 = vcmask 1040384  }
   0xe   : > { %340 = vmatpush.bf16.msra.mxu2 %v553_v2  ;;  %v555_v9 = vld [vmem:[%s172_s29] sm:$0xff]   ;;  %s181_s23 = scalar_lea.vmem %s675_s3, %s470_s20 }
   0xf   : > { %v556_v11 = vunpack.c.l.bf16 %v555_v9  ;;  %v557_v12 = vunpack.c.h.bf16 %v555_v9  ;;  %v546_v13 = vld [vmem:[%s673_s1 + $0x20] sm:$0xff] }
  0x10   : > { %247 = vmatpush.bf16.msra.mxu0 %v548_v4  ;;  %v542_v14 = vld [vmem:[%s673_s1] sm:$0xff] }
  0x11   : > { %288 = vmatpush.bf16.msra.mxu1 %v544_v5  ;;  %190 = vst.msk [vmem:[#allocation2 + $0x8] sm:$0xff] %vm187_vm0, %v556_v11  ;;  %v550_v15 = vld [vmem:[%s673_s1 + $0x40] sm:$0xff] }
  0x12   : > { %341 = vmatpush.bf16.msra.mxu2 %v552_v6  ;;  %191 = vst.msk [vmem:[#allocation2 + $0x10] sm:$0xff] %vm187_vm0, %v557_v12 }
  0x14   : > { %248 = vmatpush.bf16.msra.mxu0 %v547_v7 }
  0x15   : > { %289 = vmatpush.bf16.msra.mxu1 %v543_v8 }
  0x16   : > { %342 = vmatpush.bf16.msra.mxu2 %v551_v10 }
  0x18   : > { %249 = vmatpush.bf16.msra.mxu0 %v546_v13  ;;  %v203_v16 = vld [vmem:[#allocation2 + $0x8] sm:$0xff] }
  0x19   : > { %290 = vmatpush.bf16.msra.mxu1 %v542_v14  ;;  %v192_v17 = vld [vmem:[#allocation2 + $0x7] sm:$0xff]  ;;  %v204_v18 = vld [vmem:[#allocation2 + $0x10] sm:$0xff] }
  0x1a   : > { %343 = vmatpush.bf16.msra.mxu2 %v550_v15  ;;  %v193_v19 = vld [vmem:[#allocation2 + $0xf] sm:$0xff]  ;;  %v205_v21 = vpack.c.bf16 %v204_v18, %v203_v16 }
  0x1b   : > { %v297_v20 = vld [vmem:[#allocation2 + $0x9] sm:$0xff]  ;;  %v194_v22 = vpack.c.bf16 %v193_v19, %v192_v17  ;;  %v298_v23 = vld [vmem:[#allocation2 + $0x11] sm:$0xff] }
  0x1c   : > { %v299_v24 = vpack.c.bf16 %v298_v23, %v297_v20  ;;  %495 = vmatmul.msk.bf16.vlgmr.msra.gmra.mxu0 %vm187_vm0, %v205_v21 }
  0x1d   : > { %512 = vmatmul.msk.bf16.vlgmr.msra.gmra.mxu1 %vm187_vm0, %v194_v22 }
  0x1e   : > { %537 = vmatmul.msk.bf16.vlgmr.msra.gmra.mxu2 %vm187_vm0, %v299_v24 }
  0x99   : > { %v251_v25 = vpop.f32.mrf.mxu0 }
  0x9a   : > { %v292_v26 = vpop.f32.mrf.mxu1 }
  0x9b   : > { %v293_v28 = vadd.f32 %v292_v26, %v251_v25 }
  0xa1   : > { %v345_v27 = vpop.f32.mrf.mxu2  ;;  %v253_v29 = vpop.f32.mrf.mxu0 }
  0xa2   : > { %v294_v30 = vpop.f32.mrf.mxu1  ;;  %v350_v31 = vadd.f32 %v345_v27, %v293_v28 }
  0xa3   : > { %v295_v32 = vadd.f32 %v294_v30, %v253_v29 }
  0xa4   : > { %v363_v35 = vmul.f32 %v350_v31, %v350_v31 }
  0xa9   : > { %v347_v33 = vpop.f32.mrf.mxu2 }
  0xaa   : > { %v351_v34 = vadd.f32 %v347_v33, %v295_v32 }
  0xac   : > { %v561_v36 = vpack.c.bf16 %v351_v34, %v350_v31  ;;  %v356_v37 = vadd.f32 %v351_v34, %v350_v31  ;;  %v364_v38 = vmul.f32 %v351_v34, %v351_v34 }
  0xae   : > { %562 = vst [vmem:[%s177_s19] sm:$0xff] %v561_v36   ;;  %v357_v39 = vrot.slane %v356_v37, 4  ;;  %v365_v40 = vadd.f32 %v364_v38, %v363_v35 }
  0xb0   : > { %v358_v41 = vadd.f32 %v357_v39, %v356_v37  ;;  %v366_v42 = vrot.slane %v365_v40, 4 }
  0xb2   : > { %v359_v43 = vrot.slane %v358_v41, 2  ;;  %v367_v44 = vadd.f32 %v366_v42, %v365_v40 }
  0xb4   : > { %v360_v45 = vadd.f32 %v359_v43, %v358_v41  ;;  %v368_v46 = vrot.slane %v367_v44, 2 }
  0xb6   : > { %v361_v47 = vrot.slane %v360_v45, 1  ;;  %v369_v48 = vadd.f32 %v368_v46, %v367_v44 }
  0xb8   : > { %v370_v49 = vrot.slane %v369_v48, 1  ;;  %v362_v50 = vadd.f32 %v361_v47, %v360_v45 }
  0xba   : > { %v371_v51 = vadd.f32 %v370_v49, %v369_v48 }
  0xbc   : > { %v373_v52 = vsel %vm372_vm1, %v362_v50, %v371_v51 }
  0xbd   : > { %374 = vst [vmem:[%s181_s23] sm:$0x3] %v373_v52 }
  0xbe PF: > { %s14_s12 = sadd.s32 1, %s578_s12  }
  0xbf   : > { %p11_p4 = scmp.ge.s32.totalorder %s14_s12, 4  }
  0xc1   :  { %13 = sbr.rel (!%p11_p4) target bundleno = 1 (0x1), region = 72 }

// kernel: double_conv_block.5
= control target key start
LH: loop header
LB: loop body
LE: loop exit
PB: predicated region body
PF: predicated region fallthrough
CT: control target
= control target key end

     0   :  { %s105_s0 = inlined_call_operand.vmem [shape: bf16[32,128], index: 0, kind: input, shape index: {}]   ;;  %s106_s1 = inlined_call_operand.vmem [shape: f32[1,128], index: 1, kind: input, shape index: {}]   ;;  %s107_s2 = inlined_call_operand.vmem [shape: f32[1,128], index: 2, kind: input, shape index: {}]   ;;  %s108_s3 = inlined_call_operand.vmem [shape: f32[32,128], index: 3, kind: output, shape index: {}]  }
   0x1   :  { %v51_v0 = vld [vmem:[%s105_s0] sm:$0xff]   ;;  %v58_v5 = vld [vmem:[%s105_s0 + $0x8] sm:$0xff]  }
   0x2   :  { %v59_v1 = vld [vmem:[%s106_s1] ss:$0 sm:$0xff]  ;;  %v52_v2 = vunpack.c.l.bf16 %v51_v0  ;;  %v53_v4 = vunpack.c.h.bf16 %v51_v0  ;;  %v56_v6 = vunpack.c.l.bf16 %v58_v5  ;;  %v57_v7 = vunpack.c.h.bf16 %v58_v5 }
   0x3   :  { %v60_v3 = vld [vmem:[%s107_s2] ss:$0 sm:$0xff] }
   0x4   :  { %v26_v8 = vmul.f32 %v59_v1, %v52_v2  ;;  %v27_v9 = vmul.f32 %v59_v1, %v53_v4  ;;  %v28_v10 = vmul.f32 %v59_v1, %v56_v6  ;;  %v29_v11 = vmul.f32 %v59_v1, %v57_v7 }
   0x6   :  { %v34_v12 = vadd.f32 %v60_v3, %v26_v8  ;;  %v35_v13 = vadd.f32 %v60_v3, %v27_v9  ;;  %v36_v14 = vadd.f32 %v60_v3, %v28_v10  ;;  %v37_v15 = vadd.f32 %v60_v3, %v29_v11 }
   0x8   :  { %v38_v16 = vmax.f32 %v34_v12, 0.0  ;;  %v39_v17 = vmax.f32 %v35_v13, 0.0  ;;  %v40_v18 = vmax.f32 %v36_v14, 0.0  ;;  %v41_v19 = vmax.f32 %v37_v15, 0.0 }
   0xa   :  { %42 = vst [vmem:[%s108_s3] sm:$0xff] %v38_v16 }
   0xb   :  { %43 = vst [vmem:[%s108_s3 + $0x8] sm:$0xff] %v39_v17 }
   0xc   :  { %44 = vst [vmem:[%s108_s3 + $0x10] sm:$0xff] %v40_v18 }
   0xd   :  { %45 = vst [vmem:[%s108_s3 + $0x18] sm:$0xff] %v41_v19 }

// kernel: double_conv_block.4
= control target key start
LH: loop header
LB: loop body
LE: loop exit
PB: predicated region body
PF: predicated region fallthrough
CT: control target
= control target key end

     0   :  { %s839_s18 = smov 0   ;;  %s945_s0 = inlined_call_operand.vmem [shape: bf16[2,16,128], index: 0, kind: input, shape index: {}]   ;;  %s946_s1 = inlined_call_operand.vmem [shape: bf16[3,128,128], index: 1, kind: input, shape index: {}]   ;;  %s947_s2 = inlined_call_operand.vmem [shape: f32[1,128], index: 2, kind: input, shape index: {}]   ;;  %s948_s3 = inlined_call_operand.vmem [shape: f32[1,128], index: 3, kind: input, shape index: {}]   ;;  %s949_s4 = inlined_call_operand.vmem [shape: bf16[2,16,128], index: 4, kind: output, shape index: {0}]   ;;  %s950_s5 = inlined_call_operand.vmem [shape: f32[2,2,128], index: 5, kind: output, shape index: {1}]  }
   0x1 LB: > { %s614_s19 = sadd.s32 4294967295, %s806_s18   ;;  %p618_p0 = scmp.ge.s32.totalorder %s806_s18, 1  ;;  %s806_s18 = sphi %s839_s18, %s16_s18  }
   0x2   : > { %p190_p1 = scmp.lt.s32.totalorder %s806_s18, 3 }
   0x4   : > { %p191_p2 = pnand %p618_p0, %p190_p1 }
   0x5   : > { %p222_p3 = scmp.lt.s32.totalorder (!%p191_p2), %s614_s19, 1 }
   0x6   : > { %194 = sbr.rel (%p191_p2) target bundleno = 205 (0xcd), region = 36 }
   0xb   : > { %v771_v0 = vld [vmem:[%s946_s1 + $0x78] sm:$0xff]  ;;  %v808_v3 = vmov 0.0   ;;  %v770_v4 = vld [vmem:[%s946_s1 + $0x70] sm:$0xff]  ;;  %s952_s19 = smov (!%p222_p3, %s614_s19), 1  ;;  %v769_v7 = vld [vmem:[%s946_s1 + $0x68] sm:$0xff]  ;;  %vm525_vm0 = vcmask 1040384  }
   0xc   : > { %v763_v1 = vld [vmem:[%s946_s1 + $0x38] sm:$0xff]  ;;  %254 = vst [vmem:[#allocation2] sm:$0xff] %v808_v3  ;;  %345 = vmatpush.bf16.msra.mxu0 %v771_v0  ;;  %v762_v5 = vld [vmem:[%s946_s1 + $0x30] sm:$0xff]  ;;  %s754_s7 = sshll.u32 %s952_s19, 3  ;;  %v761_v8 = vld [vmem:[%s946_s1 + $0x28] sm:$0xff] }
   0xd   : > { %v779_v2 = vld [vmem:[%s946_s1 + $0xb8] sm:$0xff]  ;;  %407 = vmatpush.bf16.msra.mxu1 %v763_v1  ;;  %255 = vst [vmem:[#allocation2 + $0x18] sm:$0xff] %v808_v3  ;;  %v778_v6 = vld [vmem:[%s946_s1 + $0xb0] sm:$0xff]  ;;  %s226_s10 = scalar_lea.vmem %s945_s0, %s754_s7  ;;  %v777_v9 = vld [vmem:[%s946_s1 + $0xa8] sm:$0xff]  ;;  %s231_s9 = scalar_lea.vmem %s949_s4, %s754_s7 }
   0xe   : > { %489 = vmatpush.bf16.msra.mxu2 %v779_v2  ;;  %v781_v10 = vld [vmem:[%s226_s10] sm:$0xff]   ;;  %v767_v22 = vld [vmem:[%s946_s1 + $0x58] sm:$0xff]  ;;  %v766_v27 = vld [vmem:[%s946_s1 + $0x50] sm:$0xff]  ;;  %s623_s10 = sshll.u32 %s952_s19, 1 }
   0xf   : > { %v798_v11 = vld [vmem:[%s947_s2] ss:$0 sm:$0xff]  ;;  %v782_v12 = vunpack.c.l.bf16 %v781_v10  ;;  %v783_v13 = vunpack.c.h.bf16 %v781_v10  ;;  %v759_v23 = vld [vmem:[%s946_s1 + $0x18] sm:$0xff]  ;;  %v758_v28 = vld [vmem:[%s946_s1 + $0x10] sm:$0xff]  ;;  %s235_s12 = scalar_lea.vmem %s950_s5, %s623_s10 }
  0x10   : > { %346 = vmatpush.bf16.msra.mxu0 %v770_v4  ;;  %v799_v14 = vld [vmem:[%s948_s3] ss:$0 sm:$0xff]  ;;  %v775_v24 = vld [vmem:[%s946_s1 + $0x98] sm:$0xff]  ;;  %v774_v29 = vld [vmem:[%s946_s1 + $0x90] sm:$0xff] }
  0x11   : > { %408 = vmatpush.bf16.msra.mxu1 %v762_v5  ;;  %v768_v15 = vld [vmem:[%s946_s1 + $0x60] sm:$0xff]  ;;  %v244_v18 = vmul.f32 %v798_v11, %v782_v12  ;;  %v245_v19 = vmul.f32 %v798_v11, %v783_v13  ;;  %v765_v30 = vld [vmem:[%s946_s1 + $0x48] sm:$0xff] }
  0x12   : > { %490 = vmatpush.bf16.msra.mxu2 %v778_v6  ;;  %v760_v16 = vld [vmem:[%s946_s1 + $0x20] sm:$0xff]  ;;  %v757_v31 = vld [vmem:[%s946_s1 + $0x8] sm:$0xff] }
  0x13   : > { %v776_v17 = vld [vmem:[%s946_s1 + $0xa0] sm:$0xff]  ;;  %v250_v20 = vadd.f32 %v799_v14, %v244_v18  ;;  %v251_v21 = vadd.f32 %v799_v14, %v245_v19  ;;  %v773_v32 = vld [vmem:[%s946_s1 + $0x88] sm:$0xff] }
  0x14   : > { %347 = vmatpush.bf16.msra.mxu0 %v769_v7  ;;  %v764_v33 = vld [vmem:[%s946_s1 + $0x40] sm:$0xff] }
  0x15   : > { %409 = vmatpush.bf16.msra.mxu1 %v761_v8  ;;  %v252_v25 = vmax.f32 %v250_v20, 0.0  ;;  %v253_v26 = vmax.f32 %v251_v21, 0.0  ;;  %v756_v34 = vld [vmem:[%s946_s1] sm:$0xff] }
  0x16   : > { %491 = vmatpush.bf16.msra.mxu2 %v777_v9  ;;  %v772_v37 = vld [vmem:[%s946_s1 + $0x80] sm:$0xff] }
  0x17   : > { %256 = vst [vmem:[#allocation2 + $0x8] sm:$0xff] %v252_v25  ;;  %v279_v40 = vpack.c.bf16 %v253_v26, %v252_v25 }
  0x18   : > { %348 = vmatpush.bf16.msra.mxu0 %v768_v15  ;;  %257 = vst [vmem:[#allocation2 + $0x10] sm:$0xff] %v253_v26 }
  0x19   : > { %410 = vmatpush.bf16.msra.mxu1 %v760_v16 }
  0x1a   : > { %492 = vmatpush.bf16.msra.mxu2 %v776_v17 }
  0x1c   : > { %349 = vmatpush.bf16.msra.mxu0 %v767_v22 }
  0x1d   : > { %411 = vmatpush.bf16.msra.mxu1 %v759_v23 }
  0x1e   : > { %493 = vmatpush.bf16.msra.mxu2 %v775_v24  ;;  %v258_v35 = vld [vmem:[#allocation2 + $0x7] sm:$0xff] }
  0x1f   : > { %v259_v36 = vld [vmem:[#allocation2 + $0xf] sm:$0xff] }
  0x20   : > { %350 = vmatpush.bf16.msra.mxu0 %v766_v27  ;;  %v421_v38 = vld [vmem:[#allocation2 + $0x9] sm:$0xff]  ;;  %v422_v39 = vld [vmem:[#allocation2 + $0x11] sm:$0xff]  ;;  %v260_v41 = vpack.c.bf16 %v259_v36, %v258_v35 }
  0x21   : > { %412 = vmatpush.bf16.msra.mxu1 %v758_v28  ;;  %v423_v42 = vpack.c.bf16 %v422_v39, %v421_v38 }
  0x22   : > { %494 = vmatpush.bf16.msra.mxu2 %v774_v29 }
  0x24   : > { %351 = vmatpush.bf16.msra.mxu0 %v765_v30 }
  0x25   : > { %413 = vmatpush.bf16.msra.mxu1 %v757_v31 }
  0x26   : > { %495 = vmatpush.bf16.msra.mxu2 %v773_v32 }
  0x28   : > { %352 = vmatpush.bf16.msra.mxu0 %v764_v33 }
  0x29   : > { %414 = vmatpush.bf16.msra.mxu1 %v756_v34 }
  0x2a   : > { %496 = vmatpush.bf16.msra.mxu2 %v772_v37 }
  0x2b   : > { %353 = vmatmul.bf16.vlgmr.msra.gmra.mxu0 %v279_v40 }
  0x2c   : > { %415 = vmatmul.bf16.vlgmr.msra.gmra.mxu1 %v260_v41 }
  0x2d   : > { %497 = vmatmul.bf16.vlgmr.msra.gmra.mxu2 %v423_v42 }
  0xa8   : > { %v354_v43 = vpop.f32.mrf.mxu0 }
  0xa9   : > { %v416_v44 = vpop.f32.mrf.mxu1 }
  0xaa   : > { %v417_v46 = vadd.f32 %v416_v44, %v354_v43 }
  0xb0   : > { %v498_v45 = vpop.f32.mrf.mxu2  ;;  %v356_v47 = vpop.f32.mrf.mxu0 }
  0xb1   : > { %v418_v48 = vpop.f32.mrf.mxu1  ;;  %v503_v49 = vadd.f32 %v498_v45, %v417_v46 }
  0xb2   : > { %v419_v50 = vadd.f32 %v418_v48, %v356_v47 }
  0xb3   : > { %v516_v53 = vmul.f32 %v503_v49, %v503_v49 }
  0xb8   : > { %v500_v51 = vpop.f32.mrf.mxu2 }
  0xb9   : > { %v504_v52 = vadd.f32 %v500_v51, %v419_v50 }
  0xbb   : > { %v787_v54 = vpack.c.bf16 %v504_v52, %v503_v49  ;;  %v509_v55 = vadd.f32 %v504_v52, %v503_v49  ;;  %v517_v56 = vmul.f32 %v504_v52, %v504_v52 }
  0xbd   : > { %788 = vst [vmem:[%s231_s9] sm:$0xff] %v787_v54   ;;  %v510_v57 = vrot.slane %v509_v55, 4  ;;  %v518_v58 = vadd.f32 %v517_v56, %v516_v53 }
  0xbf   : > { %v511_v59 = vadd.f32 %v510_v57, %v509_v55  ;;  %v519_v60 = vrot.slane %v518_v58, 4 }
  0xc1   : > { %v512_v61 = vrot.slane %v511_v59, 2  ;;  %v520_v62 = vadd.f32 %v519_v60, %v518_v58 }
  0xc3   : > { %v513_v63 = vadd.f32 %v512_v61, %v511_v59  ;;  %v521_v0 = vrot.slane %v520_v62, 2 }
  0xc5   : > { %v514_v1 = vrot.slane %v513_v63, 1  ;;  %v522_v2 = vadd.f32 %v521_v0, %v520_v62 }
  0xc7   : > { %v523_v3 = vrot.slane %v522_v2, 1  ;;  %v515_v4 = vadd.f32 %v514_v1, %v513_v63 }
  0xc9   : > { %v524_v5 = vadd.f32 %v523_v3, %v522_v2 }
  0xcb   : > { %v526_v6 = vsel %vm525_vm0, %v515_v4, %v524_v5 }
  0xcc   : > { %527 = vst [vmem:[%s235_s12] sm:$0x3] %v526_v6 }
  0xcd PF: > { %s16_s18 = sadd.s32 1, %s806_s18  }
  0xce   : > { %p13_p4 = scmp.ge.s32.totalorder %s16_s18, 4  }
  0xd0   :  { %15 = sbr.rel (!%p13_p4) target bundleno = 1 (0x1), region = 80 }

</bundles_post_ra>
